<compile_context>
chip_gen: v6e
topology: v6e:2x2x1
jax: 0.10.0
libtpu: 0.0.40
codegen_flags: <defaults>
</compile_context>

<pallas_src>
import math

import jax
import jax.numpy as jnp
from jax import lax
from jax.experimental import pallas as pl
from jax.experimental.pallas import tpu as pltpu
import numpy as np


def _round_up(x, m):
    return ((x + m - 1) // m) * m


# ----------------------------- Pallas kernels ------------------------------

def _convT_kernel(x_ref, w_ref, b_ref, o_ref):
    # ConvTranspose2d(k=2, s=2) as one matmul, channels-first / lane-dense:
    #   x: (Cin, TP) pixels-on-lanes, w: (4*Cup, Cin), b: (4*Cup, 1)
    #   o: (4*Cup, TP) -- the 4 spatial taps are packed along the sublane dim.
    o_ref[...] = (jnp.dot(w_ref[...], x_ref[...],
                          preferred_element_type=jnp.float32) + b_ref[...])


def _make_conv3x3_bn_kernel(th, wb):
    """3x3 'same' conv over [skip, up] channel-concat + partial BN stats.

    One grid step = one halo row-block of one image:
      xa: (1, C2, L)  skip half,  xb: (1, Cup, L)  upsampled half,
      rows flattened onto lanes with row stride wb, L = (th+2)*wb + 2.
    Output block is (Cout, th*wb) with th*wb a multiple of 128 (lane-dense).
    """
    tw = th * wb

    def kernel(xa_ref, xb_ref, w_ref, b_ref, m_ref, o_ref, ps_ref, pq_ref):
        xa = xa_ref[0]
        xb = xb_ref[0]
        pieces = []
        for dy in range(3):
            for dx in range(3):
                off = dy * wb + dx          # static lane offset of this tap
                pieces.append(xa[:, off:off + tw])
                pieces.append(xb[:, off:off + tw])
        taps = jnp.concatenate(pieces, axis=0)             # (9*Cin, tw)
        # single contraction (K = 9*Cin) instead of 9 small matmuls; MXU is
        # under-filled at these channel counts, but the kernel is mem-bound.
        out = (jnp.dot(w_ref[...], taps,
                       preferred_element_type=jnp.float32) + b_ref[...])
        o_ref[...] = out                                   # lane-dense store
        # partial BatchNorm statistics (halo/junk lanes masked out)
        m = m_ref[...]                                     # (1, tw)
        ps_ref[...] = jnp.sum(out * m, axis=1, keepdims=True)[None]
        pq_ref[...] = jnp.sum(out * out * m, axis=1, keepdims=True)[None]

    return kernel


def _bn_relu_kernel(x_ref, s_ref, t_ref, o_ref):
    # y = relu(x * scale + shift); x: (Cout, tw) lane-dense, s/t: (Cout, 1).
    o_ref[...] = jnp.maximum(x_ref[...] * s_ref[...] + t_ref[...], 0.0)


# ----------------------------- wrappers ------------------------------------

def conv_transpose2x2(x1_nchw, w, b, tile_p=512):
    """ConvTranspose2d(kernel=2, stride=2). w: (Cin, Cup, 2, 2) PyTorch layout.
    Returns channels-first (Cup, N, 2H, 2W)."""
    N, Cin, H, W = x1_nchw.shape
    Cup = w.shape[1]
    P = N * H * W
    x_cf = x1_nchw.transpose(1, 0, 2, 3).reshape(Cin, P)

    tp = min(tile_p, _round_up(P, 128))
    Ppad = _round_up(P, tp)
    if Ppad != P:
        x_cf = jnp.pad(x_cf, ((0, 0), (0, Ppad - P)))

    # pack tap (di, dj) into sublane block k = 2*di + dj
    w_packed = w.transpose(2, 3, 1, 0).reshape(4 * Cup, Cin)
    b_packed = jnp.tile(b, 4).reshape(4 * Cup, 1)

    out4 = pl.pallas_call(
        _convT_kernel,
        out_shape=jax.ShapeDtypeStruct((4 * Cup, Ppad), jnp.float32),
        grid=(Ppad // tp,),
        in_specs=[pl.BlockSpec((Cin, tp), lambda p: (0, p)),
                  pl.BlockSpec((4 * Cup, Cin), lambda p: (0, 0)),
                  pl.BlockSpec((4 * Cup, 1), lambda p: (0, 0))],
        out_specs=pl.BlockSpec((4 * Cup, tp), lambda p: (0, p)),
        compiler_params=pltpu.CompilerParams(
            dimension_semantics=("parallel",)),
    )(x_cf, w_packed, b_packed)

    out4 = out4[:, :P]
    # scatter the 4 taps to their 2x2 output positions (pure layout glue)
    up = out4.reshape(2, 2, Cup, N, H, W).transpose(2, 3, 4, 0, 5, 1)
    return up.reshape(Cup, N, 2 * H, 2 * W)


def _halo_row_blocks(x_cf, th, wb):
    """x_cf: (C, N, H, W) -> (N*(H//th), C, (th+2)*wb + 2) flattened halo blocks.

    Each block = th output rows plus one halo row above/below, width-padded to
    wb (>= W+2, chosen so th*wb % 128 == 0) and row-flattened so the 9 conv
    taps are static lane slices at offsets dy*wb + dx inside the kernel."""
    C, N, H, W = x_cf.shape
    nrb = H // th
    xp = jnp.pad(x_cf, ((0, 0), (0, 0), (1, 1), (1, wb - W - 1)))
    rows = (jnp.arange(nrb)[:, None] * th
            + jnp.arange(th + 2)[None, :]).reshape(-1)
    xb = jnp.take(xp, rows, axis=2)                       # (C, N, nrb*(th+2), wb)
    xb = xb.reshape(C, N, nrb, th + 2, wb).transpose(1, 2, 0, 3, 4)
    xb = xb.reshape(N * nrb, C, (th + 2) * wb)
    return jnp.pad(xb, ((0, 0), (0, 0), (1, 1)))          # keep tap offsets >= 0


def conv3x3_bn_stats(x2_cf, up_cf, w, b, max_rows=8):
    """Fused: channel-concat([x2, up]) -> Conv2d(k=3, pad=1) -> partial BN stats.

    Inputs channels-first (C, N, H, W); w: (Cout, Cin, 3, 3), Cin = C2 + Cup.
    Returns conv output as (Cout, N*H*wb) (width-padded), per-block partial
    sums / sums-of-squares, and the geometry needed to unpack.
    """
    C2, N, H, W = x2_cf.shape
    Cup = up_cf.shape[0]
    Cin = C2 + Cup
    Cout = w.shape[0]

    # row-tile = largest divisor of H that is <= max_rows (keeps VMEM small;
    # raise max_rows for bigger images / more lanes per block).
    th = 1
    for d in range(1, min(H, max_rows) + 1):
        if H % d == 0:
            th = d
    nrb = H // th
    nblk = N * nrb
    step = 128 // math.gcd(th, 128)
    wb = _round_up(W + 2, step)          # guarantees th*wb % 128 == 0
    tw = th * wb
    L = (th + 2) * wb + 2

    xa = _halo_row_blocks(x2_cf, th, wb)   # (nblk, C2, L)
    xb = _halo_row_blocks(up_cf, th, wb)   # (nblk, Cup, L)

    # weight packed as (co, dy, dx, ci); ci order = [skip chans, up chans],
    # matching torch.cat([x2, x1], dim=1).
    wc = w.transpose(0, 2, 3, 1).reshape(Cout, 9 * Cin)
    bc = b.reshape(Cout, 1)
    lane = jnp.arange(tw) % wb
    mask = ((lane >= 1) & (lane <= W)).astype(jnp.float32).reshape(1, tw)

    kern = _make_conv3x3_bn_kernel(th, wb)
    out, psum, pssq = pl.pallas_call(
        kern,
        out_shape=(jax.ShapeDtypeStruct((Cout, nblk * tw), jnp.float32),
                   jax.ShapeDtypeStruct((nblk, Cout, 1), jnp.float32),
                   jax.ShapeDtypeStruct((nblk, Cout, 1), jnp.float32)),
        grid=(nblk,),
        in_specs=[pl.BlockSpec((1, C2, L), lambda i: (i, 0, 0)),
                  pl.BlockSpec((1, Cup, L), lambda i: (i, 0, 0)),
                  pl.BlockSpec((Cout, 9 * Cin), lambda i: (0, 0)),
                  pl.BlockSpec((Cout, 1), lambda i: (0, 0)),
                  pl.BlockSpec((1, tw), lambda i: (0, 0))],
        out_specs=(pl.BlockSpec((Cout, tw), lambda i: (0, i)),
                   pl.BlockSpec((1, Cout, 1), lambda i: (i, 0, 0)),
                   pl.BlockSpec((1, Cout, 1), lambda i: (i, 0, 0))),
        compiler_params=pltpu.CompilerParams(
            dimension_semantics=("parallel",)),
    )(xa, xb, wc, bc, mask)
    return out, psum, pssq, (N, H, W, wb, tw, nblk)


def bn_relu_apply(x_flat, scale, shift, tw, nblk):
    """Elementwise normalize + ReLU over the (Cout, pixels) slab."""
    Cout = x_flat.shape[0]
    return pl.pallas_call(
        _bn_relu_kernel,
        out_shape=jax.ShapeDtypeStruct(x_flat.shape, jnp.float32),
        grid=(nblk,),
        in_specs=[pl.BlockSpec((Cout, tw), lambda i: (0, i)),
                  pl.BlockSpec((Cout, 1), lambda i: (0, 0)),
                  pl.BlockSpec((Cout, 1), lambda i: (0, 0))],
        out_specs=pl.BlockSpec((Cout, tw), lambda i: (0, i)),
        compiler_params=pltpu.CompilerParams(
            dimension_semantics=("parallel",)),
    )(x_flat, scale.reshape(Cout, 1), shift.reshape(Cout, 1))


def up_forward(x1_nchw, x2_nchw, params, eps=1e-5):
    """Forward pass of Up(in_channels, out_channels, bilinear=False)."""
    # 1) ConvTranspose2d upsample (pixel-tiled, lane-dense matmul kernel)
    up = conv_transpose2x2(x1_nchw, params["w_up"], params["b_up"])
    x2 = jnp.transpose(x2_nchw, (1, 0, 2, 3))             # (C2, N, H2, W2)
    # 2) F.pad(x1, [dX//2, dX-dX//2, dY//2, dY-dY//2])
    diffY = x2.shape[2] - up.shape[2]
    diffX = x2.shape[3] - up.shape[3]
    up = jnp.pad(up, ((0, 0), (0, 0),
                      (diffY // 2, diffY - diffY // 2),
                      (diffX // 2, diffX - diffX // 2)))
    # 3) cat([x2, up], C) + Conv3x3 + partial BN stats fused in one kernel
    conv, psum, pssq, (N, H, W, wb, tw, nblk) = conv3x3_bn_stats(
        x2, up, params["w_conv"], params["b_conv"])
    # 4) finalize BatchNorm (training-mode biased batch stats) -- tiny glue
    count = jnp.float32(N * H * W)
    s1 = jnp.sum(psum, axis=0)[:, 0]
    s2 = jnp.sum(pssq, axis=0)[:, 0]
    mean = s1 / count
    var = s2 / count - mean * mean
    scale = params["gamma"] * lax.rsqrt(var + eps)
    shift = params["beta"] - mean * scale
    # 5) normalize + ReLU (single lane-dense elementwise pass)
    y = bn_relu_apply(conv, scale, shift, tw, nblk)
    Cout = y.shape[0]
    y = y.reshape(Cout, N, H, wb)[:, :, :, 1:1 + W]       # drop halo junk lanes
    return jnp.transpose(y, (1, 0, 2, 3))                  # back to NCHW


# ----------------------------- reference (pure JAX) ------------------------

def reference_up(x1_nchw, x2_nchw, params, eps=1e-5):
    x1 = jnp.transpose(x1_nchw, (0, 2, 3, 1))
    x2 = jnp.transpose(x2_nchw, (0, 2, 3, 1))
    w_up = params["w_up"]  # (Cin, Cout, 2, 2)
    k = jnp.flip(w_up, axis=(2, 3)).transpose(2, 3, 0, 1)  # HWIO, flipped
    up = lax.conv_general_dilated(
        x1, k, window_strides=(1, 1), padding=((1, 1), (1, 1)),
        lhs_dilation=(2, 2),
        dimension_numbers=("NHWC", "HWIO", "NHWC")) + params["b_up"]
    diffY = x2.shape[1] - up.shape[1]
    diffX = x2.shape[2] - up.shape[2]
    up = jnp.pad(up, ((0, 0), (diffY // 2, diffY - diffY // 2),
                      (diffX // 2, diffX - diffX // 2), (0, 0)))
    x = jnp.concatenate([x2, up], axis=-1)
    wk = params["w_conv"].transpose(2, 3, 1, 0)  # HWIO
    y = lax.conv_general_dilated(
        x, wk, (1, 1), ((1, 1), (1, 1)),
        dimension_numbers=("NHWC", "HWIO", "NHWC")) + params["b_conv"]
    mean = jnp.mean(y, axis=(0, 1, 2))
    var = jnp.mean((y - mean) ** 2, axis=(0, 1, 2))
    y = params["gamma"] * (y - mean) / jnp.sqrt(var + eps) + params["beta"]
    y = jnp.maximum(y, 0.0)
    return jnp.transpose(y, (0, 3, 1, 2))


# ----------------------------- main ---------------------------------------

if __name__ == "__main__":
    # Up(in_channels=8, out_channels=4, bilinear=False)
    IN_CH, OUT_CH = 8, 4
    N, H1, W1 = 2, 8, 8          # x1: deep feature map
    H2, W2 = 16, 16              # x2: skip connection (IN_CH//2 channels)

    key = jax.random.PRNGKey(0)
    k1, k2, k3, k4, k5, k6, k7, k8 = jax.random.split(key, 8)

    params = {
        # ConvTranspose2d(IN_CH, IN_CH//2, kernel_size=2, stride=2)
        "w_up": 0.1 * jax.random.normal(k1, (IN_CH, IN_CH // 2, 2, 2), jnp.float32),
        "b_up": 0.1 * jax.random.normal(k2, (IN_CH // 2,), jnp.float32),
        # Conv2d(IN_CH, OUT_CH, kernel_size=3, padding=1)
        "w_conv": 0.1 * jax.random.normal(k3, (OUT_CH, IN_CH, 3, 3), jnp.float32),
        "b_conv": 0.1 * jax.random.normal(k4, (OUT_CH,), jnp.float32),
        # BatchNorm2d(OUT_CH)
        "gamma": 1.0 + 0.1 * jax.random.normal(k5, (OUT_CH,), jnp.float32),
        "beta": 0.1 * jax.random.normal(k6, (OUT_CH,), jnp.float32),
    }

    x1 = jax.random.normal(k7, (N, IN_CH, H1, W1), jnp.float32)       # NCHW
    x2 = jax.random.normal(k8, (N, IN_CH // 2, H2, W2), jnp.float32)  # NCHW

    out = jax.block_until_ready(up_forward(x1, x2, params))
    ref = jax.block_until_ready(reference_up(x1, x2, params))

    assert out.shape == (N, OUT_CH, H2, W2), out.shape
    np.testing.assert_allclose(np.asarray(out), np.asarray(ref),
                               rtol=1e-4, atol=1e-4)
    print("KERNEL_OK")
</pallas_src>

<mosaic_0001>
module attributes {stable_mosaic.version = 11 : i64} {
  func.func @_convT_kernel(%arg0: i32, %arg1: memref<8x128xf32, #tpu.memory_space<vmem>>, %arg2: memref<16x8xf32, #tpu.memory_space<vmem>>, %arg3: memref<16x1xf32, #tpu.memory_space<vmem>>, %arg4: memref<16x128xf32, #tpu.memory_space<vmem>>) attributes {dimension_semantics = [#tpu.dimension_semantics<parallel>], iteration_bounds = array<i64: 1>, scalar_prefetch = 0 : i64, scratch_operands = 0 : i64, tpu.core_type = #tpu.core_type<tc>, window_params = [{transform_indices = @transform_0, window_bounds = array<i64: 8, 128>}, {pipeline_mode = #tpu.pipeline_mode<synchronous>, transform_indices = @transform_1, window_bounds = array<i64: 16, 8>}, {pipeline_mode = #tpu.pipeline_mode<synchronous>, transform_indices = @transform_2, window_bounds = array<i64: 16, 1>}, {transform_indices = @transform_3, window_bounds = array<i64: 16, 128>}]} {
    %c0 = arith.constant 0 : index
    %c0_0 = arith.constant 0 : index
    %0 = vector.load %arg2[%c0, %c0_0] : memref<16x8xf32, #tpu.memory_space<vmem>>, vector<16x8xf32>
    %c0_1 = arith.constant 0 : index
    %c0_2 = arith.constant 0 : index
    %1 = vector.load %arg1[%c0_1, %c0_2] : memref<8x128xf32, #tpu.memory_space<vmem>>, vector<8x128xf32>
    %cst = arith.constant dense<0.000000e+00> : vector<16x128xf32>
    %2 = tpu.matmul %0, %1, %cst {dimension_numbers = #tpu.dot_dimension_numbers<[1], [0], [0], [1], [0, 0, 1, 1], [], []>} : vector<16x8xf32>, vector<8x128xf32>, vector<16x128xf32> -> vector<16x128xf32>
    %c0_3 = arith.constant 0 : index
    %c0_4 = arith.constant 0 : index
    %3 = vector.load %arg3[%c0_3, %c0_4] : memref<16x1xf32, #tpu.memory_space<vmem>>, vector<16x1xf32>
    %4 = vector.broadcast %3 : vector<16x1xf32> to vector<16x128xf32>
    %5 = arith.addf %2, %4 : vector<16x128xf32>
    %c0_5 = arith.constant 0 : index
    %c0_6 = arith.constant 0 : index
    %6 = vector.load %arg4[%c0_5, %c0_6] : memref<16x128xf32, #tpu.memory_space<vmem>>, vector<16x128xf32>
    tpu.vector_store %arg4[%c0_5, %c0_6], %5 {strides = array<i32>} : memref<16x128xf32, #tpu.memory_space<vmem>>, vector<16x128xf32>,
    return
  }
  func.func @transform_0(%arg0: i32) -> (i32, i32) {
    %c0_i32 = arith.constant 0 : i32
    %c0_i32_0 = arith.constant 0 : i32
    return %c0_i32, %arg0 : i32, i32
  }
  func.func @transform_1(%arg0: i32) -> (i32, i32) {
    %c0_i32 = arith.constant 0 : i32
    %c0_i32_0 = arith.constant 0 : i32
    %c0_i32_1 = arith.constant 0 : i32
    return %c0_i32, %c0_i32_0 : i32, i32
  }
  func.func @transform_2(%arg0: i32) -> (i32, i32) {
    %c0_i32 = arith.constant 0 : i32
    %c0_i32_0 = arith.constant 0 : i32
    %c0_i32_1 = arith.constant 0 : i32
    return %c0_i32, %c0_i32_0 : i32, i32
  }
  func.func @transform_3(%arg0: i32) -> (i32, i32) {
    %c0_i32 = arith.constant 0 : i32
    %c0_i32_0 = arith.constant 0 : i32
    return %c0_i32, %arg0 : i32, i32
  }
}

</mosaic_0001>

<bundles_post_ra>
// kernel: tpu_custom_call.1
= control target key start
LH: loop header
LB: loop body
LE: loop exit
PB: predicated region body
PF: predicated region fallthrough
CT: control target
= control target key end

     0   :  { %vm30_vm0 = vcmask 64512   ;;  %s209_s0 = inlined_call_operand.vmem [shape: f32[8,128], index: 0, kind: input, shape index: {}]   ;;  %s210_s1 = inlined_call_operand.vmem [shape: f32[16,8], index: 1, kind: input, shape index: {}]   ;;  %s211_s2 = inlined_call_operand.vmem [shape: f32[16,1], index: 2, kind: input, shape index: {}]   ;;  %s212_s3 = inlined_call_operand.hbm [shape: f32[16,128], index: 3, kind: output, shape index: {}]  }
   0x1   :  { %v17_v0 = vld [vmem:[%s209_s0] sm:$0xff]  ;;  %v16_v2 = vld [vmem:[%s210_s1 + $0x8] sm:$0xff] }
   0x2   :  { %v15_v1 = vld [vmem:[%s210_s1] sm:$0xff]  ;;  %135 = vmatprep.subr.mxu0 %v17_v0 }
   0x3   :  { %137 = vmatprep.mubr.msk.f32.mxu0 %vm30_vm0, %v15_v1  ;;  %v18_v3 = vld [vmem:[%s211_s2] sm:$0xff] }
   0x4   :  { %8 = vsyncpa [#allocation3], 0  ;;  %136 = vmatpush3.msra.mxu0 %v17_v0  ;;  %v167_v4 = vmov 0   ;;  %v19_v5 = vld [vmem:[%s211_s2 + $0x8] sm:$0xff]  ;;  %s168_s21 = smov [#allocation2]  }
   0x5   :  { %144 = vset.pattern.permute.xlu0 %v167_v4  ;;  %138 = vmatmul.mubr.msk.f32.vlgmr.msra.gmra.mxu0 %vm30_vm0, %v16_v2  ;;  %s119_s1 = sshll.u32 %s168_s21, 4  ;;  %s120_s1 = int_to_ptr.vmem [resolvable:$true] %s119_s1 }
   0x6   :  { %22 = vperm.xlu0 %144, %v18_v3   ;;  %s145_s22 = scalar_lea.vmem %s120_s1, 256  ;;  %p150_p1 = scmp.lt.s32.totalorder %s120_s1, %s120_s1 }
   0x7   :  { %p146_p0 = scmp.ne.s32.totalorder %s120_s1, %s145_s22  ;;  %p151_p2 = scmp.lt.s32.totalorder %s145_s22, %s145_s22 }
   0x9   :  { %p152_p3 = por %p151_p2, %p150_p1 }
   0xa   :  { %27 = vperm.xlu0 %144, %v19_v5  }
   0xb   :  { %p153_p4 = pnand %p152_p3, %p146_p0 }
  0x81   :  { %v23_v6 = vpop.permute.xlu0 %22 }
  0x85   :  { %v28_v7 = vpop.permute.xlu0 %27 }
  0xc5   :  { %v139_v8 = vpop.f32.mrf.mxu0 }
  0xc6   :  { %v109_v9 = vadd.f32 %v139_v8, %v28_v7 }
  0xc7   :  { %v103_v10 = vpop.f32.mrf.mxu0 }
  0xc8   :  { %113 = vst [vmem:[#allocation2 + $0x8] sm:$0xff] %v109_v9  ;;  %v104_v11 = vadd.f32 %v103_v10, %v23_v6 }
  0xca   :  { %112 = vst [vmem:[#allocation2] sm:$0xff] %v104_v11 }
  0xcb   :  { %156 = shalt.err (!%p153_p4)
}
  0xcc   :  { %s169_s2 = smov 128   ;;  %s170_s23 = smov 8  }
  0xcd   :  { %125 = dma.vmem_to_hbm [thread:$0]  %s120_s1, 256, %s212_s3, [#allocation3], %s169_s2, %s169_s2, %s170_s23  }
  0xce   :  { %165 = dma.done.wait [#allocation3], 256  }
  0xcf   :  { %166 = vsyncadd [#allocation3], 4294967040 }
  0xd0   :  { %129 = vsyncpa [#allocation3], 1 }

</bundles_post_ra>
